<compile_context>
chip_gen: v5e
topology: v5e:2x2
jax: 0.10.0
libtpu: 0.0.40
codegen_flags: <defaults>
</compile_context>

<pallas_src>
import numpy as np
import jax
import jax.numpy as jnp
from jax.experimental import pallas as pl
from jax.experimental.pallas import tpu as pltpu

NUM_THETA = 2
NUM_PHI = 4
VIEWPE = 2
FEATURE_C = 32
NUM_LOBES = NUM_THETA * NUM_PHI                    # 8
IN_MLPC = 2 * VIEWPE * 3 + 3 + NUM_LOBES * 2       # 31
C_PACK = 4 * NUM_LOBES + 3                         # 35 packed input channels


def _softplus(x):
    # numerically stable softplus, matches torch.nn.functional.softplus
    return jnp.maximum(x, 0.0) + jnp.log1p(jnp.exp(-jnp.abs(x)))


def _round_up(x, m):
    return ((x + m - 1) // m) * m


# ----------------------------------------------------------------------------
# Pallas kernel: fused ASG rendering-equation encoding + 2-layer MLP
# (points live in lanes, channels in sublanes)
# ----------------------------------------------------------------------------
def asg_render_kernel(x_ref, om_ref,
                      wa0_ref, wa1_ref, wvd_ref,
                      ws0_ref, ws1_ref, wc0_ref, wc1_ref,
                      b1_ref, w3_ref, b3_ref,
                      out_ref):
    # packed per-point input (C_PACK, T):
    #   rows  0: 8  -> a0        rows  8:16 -> a1
    #   rows 16:32  -> la|mu (raw, pre-softplus)
    #   rows 32:35  -> viewdir
    vd = x_ref[32:35, :]                                           # (3, T)

    # single softplus over the concatenated (la|mu) slab
    lamu = _softplus(x_ref[16:32, :] - 1.0)                        # (16, T)
    la, mu = lamu[0:8], lamu[8:16]

    # fused ASG lobe dot products: [omega; omega_la; omega_mu] @ viewdir
    d = jnp.dot(om_ref[...], vd, preferred_element_type=jnp.float32)   # (24, T)
    d_o, d_la, d_mu = d[0:8], d[8:16], d[16:24]

    smooth = jnp.maximum(d_o, 0.0)
    w = smooth * jnp.exp(-(la * d_la * d_la + mu * d_mu * d_mu))   # (8, T)
    f0 = x_ref[0:8, :] * w                                          # (8, T)
    f1 = x_ref[8:16, :] * w                                         # (8, T)

    # positional encoding (viewpe=2): freq-2 terms via double-angle identities
    s0 = jnp.sin(vd)
    c0 = jnp.cos(vd)
    s1 = 2.0 * s0 * c0                                              # sin(2x)
    c1 = c0 * c0 - s0 * s0                                          # cos(2x)

    # layer1: W1^T @ concat([color_feature, viewdirs, pos_enc]) expressed as
    # partial matmuls against pre-sliced/permuted weight blocks (all outputs
    # are lane-dense (32, T); no in-kernel sublane concatenation needed).
    h = (jnp.dot(wa0_ref[...], f0, preferred_element_type=jnp.float32)
         + jnp.dot(wa1_ref[...], f1, preferred_element_type=jnp.float32)
         + jnp.dot(wvd_ref[...], vd, preferred_element_type=jnp.float32)
         + jnp.dot(ws0_ref[...], s0, preferred_element_type=jnp.float32)
         + jnp.dot(ws1_ref[...], s1, preferred_element_type=jnp.float32)
         + jnp.dot(wc0_ref[...], c0, preferred_element_type=jnp.float32)
         + jnp.dot(wc1_ref[...], c1, preferred_element_type=jnp.float32)
         + b1_ref[...])                                             # (32, T)
    h = jnp.maximum(h, 0.0)                                         # ReLU

    out_ref[...] = (jnp.dot(w3_ref[...], h, preferred_element_type=jnp.float32)
                    + b3_ref[...])                                  # (3, T)


# ----------------------------------------------------------------------------
# Wrapper: parameter plumbing, packing/transpose, padding + pallas_call
# ----------------------------------------------------------------------------
def asg_render_real(pts, viewdirs, features, normal, params, *, tile=4096):
    del pts, normal  # unused by the PyTorch forward as well
    n = viewdirs.shape[0]

    # choose an effective lane tile (multiple of 128) and pad N to it
    tile_eff = min(tile, _round_up(n, 128))
    tile_eff = _round_up(tile_eff, 128)
    n_pad = _round_up(n, tile_eff)
    grid = n_pad // tile_eff

    # --- pack per-point data into one (C_PACK, n_pad) points-in-lanes slab ---
    asg = features.reshape(n, NUM_LOBES, 4)
    x = jnp.concatenate(
        [asg[:, :, 0], asg[:, :, 1], asg[:, :, 2], asg[:, :, 3], viewdirs],
        axis=1)                                                     # (n, 35)
    if n_pad != n:
        x = jnp.pad(x, ((0, n_pad - n), (0, 0)))
    x_t = x.T                                                       # (35, n_pad)

    # --- slice/permute W1 rows to match torch's concat order, transpose ------
    # torch mlp_in: interleaved a0/a1 per lobe (16) | viewdirs (3) |
    #               PE sin (dim-major, freq-minor) (6) | PE cos (6)
    w1 = params["W1"]
    idx_a0 = np.arange(0, 2 * NUM_LOBES, 2)
    idx_a1 = np.arange(1, 2 * NUM_LOBES, 2)
    wa0 = w1[idx_a0, :].T                      # (32, 8)
    wa1 = w1[idx_a1, :].T                      # (32, 8)
    wvd = w1[16:19, :].T                       # (32, 3)
    ws0 = w1[np.array([19, 21, 23]), :].T      # (32, 3)  sin, freq 1
    ws1 = w1[np.array([20, 22, 24]), :].T      # (32, 3)  sin, freq 2
    wc0 = w1[np.array([25, 27, 29]), :].T      # (32, 3)  cos, freq 1
    wc1 = w1[np.array([26, 28, 30]), :].T      # (32, 3)  cos, freq 2
    b1 = params["b1"].reshape(FEATURE_C, 1)
    w3 = params["W3"].T                        # (3, 32)
    b3 = params["b3"].reshape(3, 1)
    om_all = jnp.concatenate(
        [params["omega"], params["omega_la"], params["omega_mu"]], axis=0)  # (24, 3)

    def const_spec(shape):
        return pl.BlockSpec(shape, lambda i: (0, 0))

    grid_spec = pltpu.PrefetchScalarGridSpec(
        num_scalar_prefetch=0,
        grid=(grid,),
        in_specs=[
            pl.BlockSpec((C_PACK, tile_eff), lambda i: (0, i)),     # packed points
            const_spec((3 * NUM_LOBES, 3)),                         # [om;om_la;om_mu]
            const_spec((FEATURE_C, NUM_LOBES)),                     # Wa0^T
            const_spec((FEATURE_C, NUM_LOBES)),                     # Wa1^T
            const_spec((FEATURE_C, 3)),                             # Wvd^T
            const_spec((FEATURE_C, 3)),                             # Ws0^T
            const_spec((FEATURE_C, 3)),                             # Ws1^T
            const_spec((FEATURE_C, 3)),                             # Wc0^T
            const_spec((FEATURE_C, 3)),                             # Wc1^T
            const_spec((FEATURE_C, 1)),                             # b1
            const_spec((3, FEATURE_C)),                             # W3^T
            const_spec((3, 1)),                                     # b3
        ],
        out_specs=pl.BlockSpec((3, tile_eff), lambda i: (0, i)),
    )

    cost = pl.CostEstimate(
        flops=2500 * n_pad,                 # ~2.4 KFLOP / point
        transcendentals=46 * n_pad,         # softplus(16) + exp(8) + sin/cos(6)
        bytes_accessed=(C_PACK + 3) * 4 * n_pad + 8 * 1024,
    )

    out_t = pl.pallas_call(
        asg_render_kernel,
        out_shape=jax.ShapeDtypeStruct((3, n_pad), jnp.float32),
        grid_spec=grid_spec,
        compiler_params=pltpu.CompilerParams(
            dimension_semantics=("parallel",),
            vmem_limit_bytes=32 * 1024 * 1024),
        cost_estimate=cost,
    )(x_t, om_all, wa0, wa1, wvd, ws0, ws1, wc0, wc1, b1, w3, b3)

    return out_t.T[:n]                                              # (n, 3)


# ----------------------------------------------------------------------------
# Deterministic parameter construction
# ----------------------------------------------------------------------------
def init_predefined_omega(num_theta, num_phi):
    # TODO(synk): original init_predefined_omega source was not provided; this is a
    # deterministic spherical-grid reimplementation with the same output shapes.
    thetas = (np.arange(num_theta) + 0.5) / num_theta * np.pi
    phis = np.arange(num_phi) / num_phi * 2.0 * np.pi
    omega, omega_la, omega_mu = [], [], []
    for th in thetas:
        for ph in phis:
            o = np.array([np.sin(th) * np.cos(ph), np.sin(th) * np.sin(ph), np.cos(th)])
            o_la = np.array([np.cos(th) * np.cos(ph), np.cos(th) * np.sin(ph), -np.sin(th)])
            o_mu = np.cross(o, o_la)
            omega.append(o)
            omega_la.append(o_la)
            omega_mu.append(o_mu)
    return (np.stack(omega).astype(np.float32),
            np.stack(omega_la).astype(np.float32),
            np.stack(omega_mu).astype(np.float32))


def init_params(key):
    k1, k2, k3 = jax.random.split(key, 3)
    om, om_la, om_mu = init_predefined_omega(NUM_THETA, NUM_PHI)
    return {
        "W1": jax.random.normal(k1, (IN_MLPC, FEATURE_C), jnp.float32) / np.sqrt(IN_MLPC),
        "b1": jax.random.normal(k2, (FEATURE_C,), jnp.float32) * 0.01,
        "W3": jax.random.normal(k3, (FEATURE_C, 3), jnp.float32) / np.sqrt(FEATURE_C),
        "b3": jnp.zeros((3,), jnp.float32),          # nn.init.constant_(bias, 0)
        "omega": jnp.asarray(om),
        "omega_la": jnp.asarray(om_la),
        "omega_mu": jnp.asarray(om_mu),
    }


# ----------------------------------------------------------------------------
# Pure-JAX reference (mirrors the PyTorch forward exactly)
# ----------------------------------------------------------------------------
def reference_forward(viewdirs, features, params):
    n = viewdirs.shape[0]
    asg = features.reshape(n, NUM_THETA, NUM_PHI, 4)
    a, la_raw, mu_raw = asg[..., 0:2], asg[..., 2:3], asg[..., 3:4]
    omega = params["omega"].reshape(1, NUM_THETA, NUM_PHI, 3)
    omega_la = params["omega_la"].reshape(1, NUM_THETA, NUM_PHI, 3)
    omega_mu = params["omega_mu"].reshape(1, NUM_THETA, NUM_PHI, 3)
    vd = viewdirs[:, None, None, :]
    smooth = jnp.maximum(jnp.sum(vd * omega, -1, keepdims=True), 0.0)
    la = _softplus(la_raw - 1.0)
    mu = _softplus(mu_raw - 1.0)
    exp_in = (-la * jnp.sum(omega_la * vd, -1, keepdims=True) ** 2
              - mu * jnp.sum(omega_mu * vd, -1, keepdims=True) ** 2)
    color_feature = (a * smooth * jnp.exp(exp_in)).reshape(n, -1)
    freq = 2.0 ** jnp.arange(VIEWPE, dtype=jnp.float32)
    pe = (viewdirs[..., None] * freq).reshape(n, VIEWPE * 3)
    pe = jnp.concatenate([jnp.sin(pe), jnp.cos(pe)], axis=-1)
    mlp_in = jnp.concatenate([color_feature, viewdirs, pe], axis=-1)
    h = jnp.maximum(mlp_in @ params["W1"] + params["b1"], 0.0)
    return h @ params["W3"] + params["b3"]


if __name__ == "__main__":
    key = jax.random.PRNGKey(0)
    kp, kv, kf, kx, kn = jax.random.split(key, 5)

    N = 250  # deliberately not a multiple of 128 to exercise wrapper-side padding
    params = init_params(kp)

    viewdirs = jax.random.normal(kv, (N, 3), jnp.float32)
    viewdirs = viewdirs / jnp.linalg.norm(viewdirs, axis=-1, keepdims=True)
    features = jax.random.normal(kf, (N, NUM_THETA * NUM_PHI * 4), jnp.float32) * 0.5
    pts = jax.random.normal(kx, (N, 3), jnp.float32)        # unused by forward
    normal = jax.random.normal(kn, (N, 3), jnp.float32)     # unused by forward

    rgb = asg_render_real(pts, viewdirs, features, normal, params, tile=4096)
    rgb = jax.block_until_ready(rgb)

    ref = jax.block_until_ready(reference_forward(viewdirs, features, params))
    np.testing.assert_allclose(np.asarray(rgb), np.asarray(ref), rtol=2e-3, atol=2e-3)

    print("KERNEL_OK")
</pallas_src>

<mosaic_0001>
module attributes {stable_mosaic.version = 11 : i64} {
  func.func @asg_render_kernel(%arg0: i32, %arg1: memref<35x256xf32, #tpu.memory_space<vmem>>, %arg2: memref<24x3xf32, #tpu.memory_space<vmem>>, %arg3: memref<32x8xf32, #tpu.memory_space<vmem>>, %arg4: memref<32x8xf32, #tpu.memory_space<vmem>>, %arg5: memref<32x3xf32, #tpu.memory_space<vmem>>, %arg6: memref<32x3xf32, #tpu.memory_space<vmem>>, %arg7: memref<32x3xf32, #tpu.memory_space<vmem>>, %arg8: memref<32x3xf32, #tpu.memory_space<vmem>>, %arg9: memref<32x3xf32, #tpu.memory_space<vmem>>, %arg10: memref<32x1xf32, #tpu.memory_space<vmem>>, %arg11: memref<3x32xf32, #tpu.memory_space<vmem>>, %arg12: memref<3x1xf32, #tpu.memory_space<vmem>>, %arg13: memref<3x256xf32, #tpu.memory_space<vmem>>) attributes {dimension_semantics = [#tpu.dimension_semantics<parallel>], iteration_bounds = array<i64: 1>, scalar_prefetch = 0 : i64, scratch_operands = 0 : i64, tpu.core_type = #tpu.core_type<tc>, window_params = [{transform_indices = @transform_0, window_bounds = array<i64: 35, 256>}, {pipeline_mode = #tpu.pipeline_mode<synchronous>, transform_indices = @transform_1, window_bounds = array<i64: 24, 3>}, {pipeline_mode = #tpu.pipeline_mode<synchronous>, transform_indices = @transform_2, window_bounds = array<i64: 32, 8>}, {pipeline_mode = #tpu.pipeline_mode<synchronous>, transform_indices = @transform_3, window_bounds = array<i64: 32, 8>}, {pipeline_mode = #tpu.pipeline_mode<synchronous>, transform_indices = @transform_4, window_bounds = array<i64: 32, 3>}, {pipeline_mode = #tpu.pipeline_mode<synchronous>, transform_indices = @transform_5, window_bounds = array<i64: 32, 3>}, {pipeline_mode = #tpu.pipeline_mode<synchronous>, transform_indices = @transform_6, window_bounds = array<i64: 32, 3>}, {pipeline_mode = #tpu.pipeline_mode<synchronous>, transform_indices = @transform_7, window_bounds = array<i64: 32, 3>}, {pipeline_mode = #tpu.pipeline_mode<synchronous>, transform_indices = @transform_8, window_bounds = array<i64: 32, 3>}, {pipeline_mode = #tpu.pipeline_mode<synchronous>, transform_indices = @transform_9, window_bounds = array<i64: 32, 1>}, {pipeline_mode = #tpu.pipeline_mode<synchronous>, transform_indices = @transform_10, window_bounds = array<i64: 3, 32>}, {pipeline_mode = #tpu.pipeline_mode<synchronous>, transform_indices = @transform_11, window_bounds = array<i64: 3, 1>}, {transform_indices = @transform_12, window_bounds = array<i64: 3, 256>}]} {
    %c32 = arith.constant 32 : index
    %c0 = arith.constant 0 : index
    %0 = vector.load %arg1[%c32, %c0] : memref<35x256xf32, #tpu.memory_space<vmem>>, vector<3x256xf32>
    %c16 = arith.constant 16 : index
    %c0_0 = arith.constant 0 : index
    %1 = vector.load %arg1[%c16, %c0_0] : memref<35x256xf32, #tpu.memory_space<vmem>>, vector<16x256xf32>
    %cst = arith.constant 1.000000e+00 : f32
    %2 = vector.broadcast %cst : f32 to vector<16x256xf32>
    %3 = arith.subf %1, %2 : vector<16x256xf32>
    %cst_1 = arith.constant 0.000000e+00 : f32
    %4 = vector.broadcast %cst_1 : f32 to vector<16x256xf32>
    %5 = arith.maximumf %3, %4 : vector<16x256xf32>
    %6 = math.absf %3 : vector<16x256xf32>
    %cst_2 = arith.constant 0.000000e+00 : f32
    %7 = vector.broadcast %cst_2 : f32 to vector<16x256xf32>
    %8 = arith.subf %7, %6 : vector<16x256xf32>
    %9 = math.exp %8 : vector<16x256xf32>
    %10 = math.log1p %9 : vector<16x256xf32>
    %11 = arith.addf %5, %10 : vector<16x256xf32>
    %12 = vector.extract_strided_slice %11 {offsets = [0, 0], sizes = [8, 256], strides = [1, 1]} : vector<16x256xf32> to vector<8x256xf32>
    %13 = vector.extract_strided_slice %11 {offsets = [8, 0], sizes = [8, 256], strides = [1, 1]} : vector<16x256xf32> to vector<8x256xf32>
    %c0_3 = arith.constant 0 : index
    %c0_4 = arith.constant 0 : index
    %14 = vector.load %arg2[%c0_3, %c0_4] : memref<24x3xf32, #tpu.memory_space<vmem>>, vector<24x3xf32>
    %cst_5 = arith.constant dense<0.000000e+00> : vector<24x256xf32>
    %15 = tpu.matmul %14, %0, %cst_5 {dimension_numbers = #tpu.dot_dimension_numbers<[1], [0], [0], [1], [0, 0, 1, 1], [], []>} : vector<24x3xf32>, vector<3x256xf32>, vector<24x256xf32> -> vector<24x256xf32>
    %16 = vector.extract_strided_slice %15 {offsets = [0, 0], sizes = [8, 256], strides = [1, 1]} : vector<24x256xf32> to vector<8x256xf32>
    %17 = vector.extract_strided_slice %15 {offsets = [8, 0], sizes = [8, 256], strides = [1, 1]} : vector<24x256xf32> to vector<8x256xf32>
    %18 = vector.extract_strided_slice %15 {offsets = [16, 0], sizes = [8, 256], strides = [1, 1]} : vector<24x256xf32> to vector<8x256xf32>
    %cst_6 = arith.constant 0.000000e+00 : f32
    %19 = vector.broadcast %cst_6 : f32 to vector<8x256xf32>
    %20 = arith.maximumf %16, %19 : vector<8x256xf32>
    %21 = arith.mulf %12, %17 : vector<8x256xf32>
    %22 = arith.mulf %21, %17 : vector<8x256xf32>
    %23 = arith.mulf %13, %18 : vector<8x256xf32>
    %24 = arith.mulf %23, %18 : vector<8x256xf32>
    %25 = arith.addf %22, %24 : vector<8x256xf32>
    %cst_7 = arith.constant 0.000000e+00 : f32
    %26 = vector.broadcast %cst_7 : f32 to vector<8x256xf32>
    %27 = arith.subf %26, %25 : vector<8x256xf32>
    %28 = math.exp %27 : vector<8x256xf32>
    %29 = arith.mulf %20, %28 : vector<8x256xf32>
    %c0_8 = arith.constant 0 : index
    %c0_9 = arith.constant 0 : index
    %30 = vector.load %arg1[%c0_8, %c0_9] : memref<35x256xf32, #tpu.memory_space<vmem>>, vector<8x256xf32>
    %31 = arith.mulf %30, %29 : vector<8x256xf32>
    %c8 = arith.constant 8 : index
    %c0_10 = arith.constant 0 : index
    %32 = vector.load %arg1[%c8, %c0_10] : memref<35x256xf32, #tpu.memory_space<vmem>>, vector<8x256xf32>
    %33 = arith.mulf %32, %29 : vector<8x256xf32>
    %34 = math.sin %0 : vector<3x256xf32>
    %35 = math.cos %0 : vector<3x256xf32>
    %cst_11 = arith.constant 2.000000e+00 : f32
    %36 = vector.broadcast %cst_11 : f32 to vector<3x256xf32>
    %37 = arith.mulf %36, %34 : vector<3x256xf32>
    %38 = arith.mulf %37, %35 : vector<3x256xf32>
    %39 = arith.mulf %35, %35 : vector<3x256xf32>
    %40 = arith.mulf %34, %34 : vector<3x256xf32>
    %41 = arith.subf %39, %40 : vector<3x256xf32>
    %c0_12 = arith.constant 0 : index
    %c0_13 = arith.constant 0 : index
    %42 = vector.load %arg3[%c0_12, %c0_13] : memref<32x8xf32, #tpu.memory_space<vmem>>, vector<32x8xf32>
    %cst_14 = arith.constant dense<0.000000e+00> : vector<32x256xf32>
    %43 = tpu.matmul %42, %31, %cst_14 {dimension_numbers = #tpu.dot_dimension_numbers<[1], [0], [0], [1], [0, 0, 1, 1], [], []>} : vector<32x8xf32>, vector<8x256xf32>, vector<32x256xf32> -> vector<32x256xf32>
    %c0_15 = arith.constant 0 : index
    %c0_16 = arith.constant 0 : index
    %44 = vector.load %arg4[%c0_15, %c0_16] : memref<32x8xf32, #tpu.memory_space<vmem>>, vector<32x8xf32>
    %cst_17 = arith.constant dense<0.000000e+00> : vector<32x256xf32>
    %45 = tpu.matmul %44, %33, %cst_17 {dimension_numbers = #tpu.dot_dimension_numbers<[1], [0], [0], [1], [0, 0, 1, 1], [], []>} : vector<32x8xf32>, vector<8x256xf32>, vector<32x256xf32> -> vector<32x256xf32>
    %46 = arith.addf %43, %45 : vector<32x256xf32>
    %c0_18 = arith.constant 0 : index
    %c0_19 = arith.constant 0 : index
    %47 = vector.load %arg5[%c0_18, %c0_19] : memref<32x3xf32, #tpu.memory_space<vmem>>, vector<32x3xf32>
    %cst_20 = arith.constant dense<0.000000e+00> : vector<32x256xf32>
    %48 = tpu.matmul %47, %0, %cst_20 {dimension_numbers = #tpu.dot_dimension_numbers<[1], [0], [0], [1], [0, 0, 1, 1], [], []>} : vector<32x3xf32>, vector<3x256xf32>, vector<32x256xf32> -> vector<32x256xf32>
    %49 = arith.addf %46, %48 : vector<32x256xf32>
    %c0_21 = arith.constant 0 : index
    %c0_22 = arith.constant 0 : index
    %50 = vector.load %arg6[%c0_21, %c0_22] : memref<32x3xf32, #tpu.memory_space<vmem>>, vector<32x3xf32>
    %cst_23 = arith.constant dense<0.000000e+00> : vector<32x256xf32>
    %51 = tpu.matmul %50, %34, %cst_23 {dimension_numbers = #tpu.dot_dimension_numbers<[1], [0], [0], [1], [0, 0, 1, 1], [], []>} : vector<32x3xf32>, vector<3x256xf32>, vector<32x256xf32> -> vector<32x256xf32>
    %52 = arith.addf %49, %51 : vector<32x256xf32>
    %c0_24 = arith.constant 0 : index
    %c0_25 = arith.constant 0 : index
    %53 = vector.load %arg7[%c0_24, %c0_25] : memref<32x3xf32, #tpu.memory_space<vmem>>, vector<32x3xf32>
    %cst_26 = arith.constant dense<0.000000e+00> : vector<32x256xf32>
    %54 = tpu.matmul %53, %38, %cst_26 {dimension_numbers = #tpu.dot_dimension_numbers<[1], [0], [0], [1], [0, 0, 1, 1], [], []>} : vector<32x3xf32>, vector<3x256xf32>, vector<32x256xf32> -> vector<32x256xf32>
    %55 = arith.addf %52, %54 : vector<32x256xf32>
    %c0_27 = arith.constant 0 : index
    %c0_28 = arith.constant 0 : index
    %56 = vector.load %arg8[%c0_27, %c0_28] : memref<32x3xf32, #tpu.memory_space<vmem>>, vector<32x3xf32>
    %cst_29 = arith.constant dense<0.000000e+00> : vector<32x256xf32>
    %57 = tpu.matmul %56, %35, %cst_29 {dimension_numbers = #tpu.dot_dimension_numbers<[1], [0], [0], [1], [0, 0, 1, 1], [], []>} : vector<32x3xf32>, vector<3x256xf32>, vector<32x256xf32> -> vector<32x256xf32>
    %58 = arith.addf %55, %57 : vector<32x256xf32>
    %c0_30 = arith.constant 0 : index
    %c0_31 = arith.constant 0 : index
    %59 = vector.load %arg9[%c0_30, %c0_31] : memref<32x3xf32, #tpu.memory_space<vmem>>, vector<32x3xf32>
    %cst_32 = arith.constant dense<0.000000e+00> : vector<32x256xf32>
    %60 = tpu.matmul %59, %41, %cst_32 {dimension_numbers = #tpu.dot_dimension_numbers<[1], [0], [0], [1], [0, 0, 1, 1], [], []>} : vector<32x3xf32>, vector<3x256xf32>, vector<32x256xf32> -> vector<32x256xf32>
    %61 = arith.addf %58, %60 : vector<32x256xf32>
    %c0_33 = arith.constant 0 : index
    %c0_34 = arith.constant 0 : index
    %62 = vector.load %arg10[%c0_33, %c0_34] : memref<32x1xf32, #tpu.memory_space<vmem>>, vector<32x1xf32>
    %63 = vector.broadcast %62 : vector<32x1xf32> to vector<32x256xf32>
    %64 = arith.addf %61, %63 : vector<32x256xf32>
    %cst_35 = arith.constant 0.000000e+00 : f32
    %65 = vector.broadcast %cst_35 : f32 to vector<32x256xf32>
    %66 = arith.maximumf %64, %65 : vector<32x256xf32>
    %c0_36 = arith.constant 0 : index
    %c0_37 = arith.constant 0 : index
    %67 = vector.load %arg11[%c0_36, %c0_37] : memref<3x32xf32, #tpu.memory_space<vmem>>, vector<3x32xf32>
    %cst_38 = arith.constant dense<0.000000e+00> : vector<3x256xf32>
    %68 = tpu.matmul %67, %66, %cst_38 {dimension_numbers = #tpu.dot_dimension_numbers<[1], [0], [0], [1], [0, 0, 1, 1], [], []>} : vector<3x32xf32>, vector<32x256xf32>, vector<3x256xf32> -> vector<3x256xf32>
    %c0_39 = arith.constant 0 : index
    %c0_40 = arith.constant 0 : index
    %69 = vector.load %arg12[%c0_39, %c0_40] : memref<3x1xf32, #tpu.memory_space<vmem>>, vector<3x1xf32>
    %70 = vector.broadcast %69 : vector<3x1xf32> to vector<3x256xf32>
    %71 = arith.addf %68, %70 : vector<3x256xf32>
    %c0_41 = arith.constant 0 : index
    %c0_42 = arith.constant 0 : index
    %72 = vector.load %arg13[%c0_41, %c0_42] : memref<3x256xf32, #tpu.memory_space<vmem>>, vector<3x256xf32>
    tpu.vector_store %arg13[%c0_41, %c0_42], %71 {strides = array<i32>} : memref<3x256xf32, #tpu.memory_space<vmem>>, vector<3x256xf32>,
    return
  }
  func.func @transform_0(%arg0: i32) -> (i32, i32) {
    %c0_i32 = arith.constant 0 : i32
    %c0_i32_0 = arith.constant 0 : i32
    return %c0_i32, %arg0 : i32, i32
  }
  func.func @transform_1(%arg0: i32) -> (i32, i32) {
    %c0_i32 = arith.constant 0 : i32
    %c0_i32_0 = arith.constant 0 : i32
    %c0_i32_1 = arith.constant 0 : i32
    return %c0_i32, %c0_i32_0 : i32, i32
  }
  func.func @transform_2(%arg0: i32) -> (i32, i32) {
    %c0_i32 = arith.constant 0 : i32
    %c0_i32_0 = arith.constant 0 : i32
    %c0_i32_1 = arith.constant 0 : i32
    return %c0_i32, %c0_i32_0 : i32, i32
  }
  func.func @transform_3(%arg0: i32) -> (i32, i32) {
    %c0_i32 = arith.constant 0 : i32
    %c0_i32_0 = arith.constant 0 : i32
    %c0_i32_1 = arith.constant 0 : i32
    return %c0_i32, %c0_i32_0 : i32, i32
  }
  func.func @transform_4(%arg0: i32) -> (i32, i32) {
    %c0_i32 = arith.constant 0 : i32
    %c0_i32_0 = arith.constant 0 : i32
    %c0_i32_1 = arith.constant 0 : i32
    return %c0_i32, %c0_i32_0 : i32, i32
  }
  func.func @transform_5(%arg0: i32) -> (i32, i32) {
    %c0_i32 = arith.constant 0 : i32
    %c0_i32_0 = arith.constant 0 : i32
    %c0_i32_1 = arith.constant 0 : i32
    return %c0_i32, %c0_i32_0 : i32, i32
  }
  func.func @transform_6(%arg0: i32) -> (i32, i32) {
    %c0_i32 = arith.constant 0 : i32
    %c0_i32_0 = arith.constant 0 : i32
    %c0_i32_1 = arith.constant 0 : i32
    return %c0_i32, %c0_i32_0 : i32, i32
  }
  func.func @transform_7(%arg0: i32) -> (i32, i32) {
    %c0_i32 = arith.constant 0 : i32
    %c0_i32_0 = arith.constant 0 : i32
    %c0_i32_1 = arith.constant 0 : i32
    return %c0_i32, %c0_i32_0 : i32, i32
  }
  func.func @transform_8(%arg0: i32) -> (i32, i32) {
    %c0_i32 = arith.constant 0 : i32
    %c0_i32_0 = arith.constant 0 : i32
    %c0_i32_1 = arith.constant 0 : i32
    return %c0_i32, %c0_i32_0 : i32, i32
  }
  func.func @transform_9(%arg0: i32) -> (i32, i32) {
    %c0_i32 = arith.constant 0 : i32
    %c0_i32_0 = arith.constant 0 : i32
    %c0_i32_1 = arith.constant 0 : i32
    return %c0_i32, %c0_i32_0 : i32, i32
  }
  func.func @transform_10(%arg0: i32) -> (i32, i32) {
    %c0_i32 = arith.constant 0 : i32
    %c0_i32_0 = arith.constant 0 : i32
    %c0_i32_1 = arith.constant 0 : i32
    return %c0_i32, %c0_i32_0 : i32, i32
  }
  func.func @transform_11(%arg0: i32) -> (i32, i32) {
    %c0_i32 = arith.constant 0 : i32
    %c0_i32_0 = arith.constant 0 : i32
    %c0_i32_1 = arith.constant 0 : i32
    return %c0_i32, %c0_i32_0 : i32, i32
  }
  func.func @transform_12(%arg0: i32) -> (i32, i32) {
    %c0_i32 = arith.constant 0 : i32
    %c0_i32_0 = arith.constant 0 : i32
    return %c0_i32, %arg0 : i32, i32
  }
}

</mosaic_0001>

<bundles_post_ra>
// kernel: tpu_custom_call.1
= control target key start
LH: loop header
LB: loop body
LE: loop exit
PB: predicated region body
PF: predicated region fallthrough
CT: control target
= control target key end

     0   :  { %vm125_vm0 = vcmask 1042432   ;;  %vm115_vm1 = vcmask 23552   ;;  %s2278_s0 = inlined_call_operand.vmem [shape: f32[35,256], index: 0, kind: input, shape index: {}]   ;;  %s2279_s1 = inlined_call_operand.vmem [shape: f32[24,3], index: 1, kind: input, shape index: {}]   ;;  %s2280_s2 = inlined_call_operand.vmem [shape: f32[32,8], index: 2, kind: input, shape index: {}]   ;;  %s2281_s3 = inlined_call_operand.vmem [shape: f32[32,8], index: 3, kind: input, shape index: {}]   ;;  %s2282_s4 = inlined_call_operand.vmem [shape: f32[32,3], index: 4, kind: input, shape index: {}]   ;;  %s2283_s5 = inlined_call_operand.vmem [shape: f32[32,3], index: 5, kind: input, shape index: {}]   ;;  %s2284_s6 = inlined_call_operand.vmem [shape: f32[32,3], index: 6, kind: input, shape index: {}]   ;;  %s2285_s7 = inlined_call_operand.vmem [shape: f32[32,3], index: 7, kind: input, shape index: {}]   ;;  %s2286_s8 = inlined_call_operand.vmem [shape: f32[32,3], index: 8, kind: input, shape index: {}]   ;;  %s2287_s9 = inlined_call_operand.vmem [shape: f32[32,1], index: 9, kind: input, shape index: {}]   ;;  %s2288_s10 = inlined_call_operand.vmem [shape: f32[3,32], index: 10, kind: input, shape index: {}]   ;;  %s2289_s11 = inlined_call_operand.vmem [shape: f32[3,1], index: 11, kind: input, shape index: {}]   ;;  %s2290_s12 = inlined_call_operand.hbm [shape: f32[3,256], index: 12, kind: output, shape index: {}]  }
   0x1   :  { %v1762_v0 = vld [vmem:[%s2278_s0 + $0x40] sm:$0x7]  ;;  %v1767_v1 = vld [vmem:[%s2278_s0 + $0x48] sm:$0x7] }
   0x2   :  { %v112_v2 = vld [vmem:[%s2279_s1] sm:$0xff]  ;;  %1541 = vmatpush.msk.msra.mxu0 %vm125_vm0, %v1762_v0  ;;  %1545 = vmatpush.msk.msra.mxu1 %vm125_vm0, %v1767_v1 }
   0x3   :  { %1542 = vmatmul.msk.f32.vlgmr.msra.gmra.mxu0 %vm115_vm1, %v112_v2  ;;  %1546 = vmatmul.msk.f32.vlgmr.msra.gmra.mxu1 %vm115_vm1, %v112_v2 }
   0x4   :  { %17 = vsyncpa [#allocation3], 0  ;;  %v113_v3 = vld [vmem:[%s2279_s1 + $0x8] sm:$0xff]  ;;  %v114_v4 = vld [vmem:[%s2279_s1 + $0x10] sm:$0xff]  ;;  %v215_v5 = vand.u32 2139095040, %v1762_v0  ;;  %v370_v10 = vand.u32 2139095040, %v1767_v1 }
   0x5   :  { %v44_v8 = vld [vmem:[%s2278_s0 + $0x20] sm:$0xff]  ;;  %v45_v9 = vld [vmem:[%s2278_s0 + $0x28] sm:$0xff]  ;;  %v46_v21 = vld [vmem:[%s2278_s0 + $0x30] sm:$0xff]  ;;  %v212_v39 = vand.u32 2147483647, %v1762_v0  ;;  %s1693_s23 = smov [#allocation2]  }
   0x6   :  { %v216_v6 = vshrl.u32 %v215_v5, 23  ;;  %v1796_v11 = vadd.f32 -1.0, %v44_v8  ;;  %v1798_v12 = vadd.f32 -1.0, %v45_v9  ;;  %v371_v16 = vshrl.u32 %v370_v10, 23  ;;  %v47_v22 = vld [vmem:[%s2278_s0 + $0x38] sm:$0xff]  ;;  %s1528_s25 = sshll.u32 %s2290_s12, 4  ;;  %s1529_s25 = int_to_ptr.hbm [resolvable:$true] %s1528_s25 }
   0x7   :  { %v1808_v24 = vadd.f32 -1.0, %v46_v21  ;;  %v1810_v25 = vadd.f32 -1.0, %v47_v22  ;;  %v1819_v44 = vand.u32 8388607, %v212_v39  ;;  %v1686_v47 = vmov 683565275  }
   0x8   :  { %v1549_v7 = vadd.s32 4294967169, %v216_v6  ;;  %v56_v13 = vand.u32 2147483647, %v1796_v11  ;;  %v57_v14 = vand.u32 2147483647, %v1798_v12  ;;  %v1552_v23 = vadd.s32 4294967169, %v371_v16 }
   0x9   :  { %v58_v27 = vand.u32 2147483647, %v1808_v24  ;;  %v59_v28 = vand.u32 2147483647, %v1810_v25  ;;  %v1687_v49 = vmov 2475754826  }
   0xa   :  { %v222_v15 = vadd.s32 1, %v1549_v7  ;;  %v60_v17 = vsub.f32 0.0, %v56_v13  ;;  %v61_v18 = vsub.f32 0.0, %v57_v14  ;;  %v377_v29 = vadd.s32 1, %v1552_v23 }
   0xb   :  { %1543 = vmatmul.msk.f32.gmra.mxu0 %vm115_vm1, %v113_v3  ;;  %1547 = vmatmul.msk.f32.gmra.mxu1 %vm115_vm1, %v113_v3  ;;  %v62_v30 = vsub.f32 0.0, %v58_v27  ;;  %v63_v31 = vsub.f32 0.0, %v59_v28  ;;  %v1688_v54 = vmov 2102212464   ;;  %v1689_v60 = vmov 2131351028  }
   0xc   :  { %v64_v19 = vmul.f32 1.442695, %v60_v17  ;;  %v66_v20 = vmul.f32 1.442695, %v61_v18  ;;  %vm223_vm2 = vcmp.gt.s32.totalorder %v222_v15, 0  ;;  %vm378_vm3 = vcmp.gt.s32.totalorder %v377_v29, 0 }
   0xd   :  { %v224_v26 = vsel %vm223_vm2, %v222_v15, 0  ;;  %v68_v34 = vmul.f32 1.442695, %v62_v30  ;;  %v70_v37 = vmul.f32 1.442695, %v63_v31  ;;  %v379_v41 = vsel %vm378_vm3, %v377_v29, 0 }
   0xe   :  { %1640 = vpow2.f32 %v64_v19  ;;  %v226_v32 = vand.u32 31, %v224_v26  ;;  %v1821_v45 = vshrl.u32 %v224_v26, 5  ;;  %v1829_v57 = vand.u32 31, %v379_v41 }
   0xf   :  { %1642 = vpow2.f32 %v66_v20  ;;  %v220_v63 = vor.u32 8388608, %v1819_v44  ;;  %v52_v7 = vmax.f32 %v1796_v11, 0.0  ;;  %v53_v11 = vmax.f32 %v1798_v12, 0.0 }
  0x10   :  { %1644 = vpow2.f32 %v68_v34  ;;  %v1815_v40 = vsub.s32 32, %v226_v32  ;;  %v229_v48 = vshll.u32 %v1686_v47, %v226_v32  ;;  %v238_v55 = vshll.u32 %v1688_v54, %v226_v32 }
  0x11   :  { %v232_v59 = vshll.u32 %v1687_v49, %v226_v32  ;;  %v235_v2 = vshll.u32 %v1689_v60, %v226_v32  ;;  %v1691_v23 = vmov 1326507024   ;;  %vm244_vm6 = vcmp.lt.s32.totalorder %v1821_v45, 1 }
  0x12   :  { %v230_v50 = vshrl.u32 %v1687_v49, %v1815_v40  ;;  %v233_v61 = vshrl.u32 %v1689_v60, %v1815_v40  ;;  %v236_v3 = vshrl.u32 %v1688_v54, %v1815_v40  ;;  %v242_v26 = vshrl.u32 %v1691_v23, %v1815_v40 }
  0x13   :  { %1544 = vmatmul.msk.f32.gmra.mxu0 %vm115_vm1, %v114_v4  ;;  %1548 = vmatmul.msk.f32.gmra.mxu1 %vm115_vm1, %v114_v4  ;;  %v1690_v4 = vmov 920167782   ;;  %vm246_vm7 = vcmp.lt.s32.totalorder %v1821_v45, 3  ;;  %vm247_vm8 = vcmp.lt.s32.totalorder %v1821_v45, 4  ;;  %vm245_vm9 = vcmp.lt.s32.totalorder %v1821_v45, 2 }
  0x14   :  { %v1641_v33 = vpop.eup %1640  ;;  %v239_v5 = vshrl.u32 %v1690_v4, %v1815_v40  ;;  %v231_v10 = vor.u32 %v230_v50, %v229_v48  ;;  %v241_v19 = vshll.u32 %v1690_v4, %v226_v32  ;;  %v234_v21 = vor.u32 %v233_v61, %v232_v59 }
  0x15   :  { %v1643_v35 = vpop.eup %1642  ;;  %v72_v36 = vadd.f32 1.0, %v1641_v33  ;;  %v75_v42 = vmul.f32 -0.5, %v1641_v33  ;;  %v78_v46 = vand.u32 2147483647, %v1641_v33  ;;  %v237_v22 = vor.u32 %v236_v3, %v235_v2 }
  0x16   :  { %v81_v38 = vadd.f32 1.0, %v1643_v35  ;;  %v84_v43 = vmul.f32 -0.5, %v1643_v35  ;;  %v1826_v51 = vpop.eup %1644  ;;  %v87_v58 = vand.u32 2147483647, %v1643_v35  ;;  %v240_v16 = vor.u32 %v239_v5, %v238_v55 }
  0x17   :  { %1646 = vlog2.f32 %v72_v36  ;;  %v76_v52 = vadd.f32 1.0, %v75_v42  ;;  %vm1843_vm4 = vcmp.lt.f32.partialorder %v78_v46, 0.0004427343  ;;  %v90_v18 = vadd.f32 1.0, %v1826_v51 }
  0x18   :  { %1648 = vlog2.f32 %v81_v38  ;;  %v85_v53 = vadd.f32 1.0, %v84_v43  ;;  %vm1847_vm5 = vcmp.lt.f32.partialorder %v87_v58, 0.0004427343  ;;  %v93_v28 = vmul.f32 -0.5, %v1826_v51 }
  0x19   :  { %1650 = vpow2.f32 %v70_v37  ;;  %v77_v13 = vmul.f32 %v1641_v33, %v76_v52  ;;  %v253_v29 = vsel %vm247_vm8, %v240_v16, 920167782  ;;  %v243_v31 = vor.u32 %v242_v26, %v241_v19 }
  0x1a   :  { %v86_v15 = vmul.f32 %v1643_v35, %v85_v53  ;;  %1652 = vlog2.f32 %v90_v18  ;;  %v1868_v32 = vshrl.u32 %v379_v41, 5  ;;  %v252_v33 = vsel %vm244_vm6, %v231_v10, %v234_v21 }
  0x1b   :  { %v254_v34 = vsel %vm246_vm7, %v237_v22, %v253_v29  ;;  %v1876_v35 = vsub.s32 32, %v1829_v57  ;;  %v94_v38 = vadd.f32 1.0, %v93_v28  ;;  %v256_v41 = vsel %vm244_vm6, %v234_v21, %v237_v22 }
  0x1c   :  { %v257_v42 = vsel %vm247_vm8, %v243_v31, 1326507024  ;;  %v1886_v43 = vshll.u32 %v220_v63, 8  ;;  %v255_v46 = vsel %vm245_vm9, %v252_v33, %v254_v34  ;;  %v96_v59 = vand.u32 2147483647, %v1826_v51 }
  0x1d   :  { %v1647_v56 = vpop.eup %1646  ;;  %v258_v48 = vsel %vm246_vm7, %v240_v16, %v257_v42  ;;  %v285_v55 = vand.u32 65535, %v255_v46  ;;  %v228_v61 = vshrl.u32 %v1686_v47, %v1815_v40  ;;  %v54_v2 = vmax.f32 %v1808_v24, 0.0 }
  0x1e   :  { %v1649_v62 = vpop.eup %1648  ;;  %v74_v8 = vmul.f32 0.6931472, %v1647_v56  ;;  %v259_v50 = vsel %vm245_vm9, %v256_v41, %v258_v48  ;;  %v261_v52 = vand.u32 65535, %v1886_v43  ;;  %v262_v53 = vshrl.u32 %v1886_v43, 16 }
  0x1f   :  { %v1840_v6 = vpop.eup %1650  ;;  %v83_v14 = vmul.f32 0.6931472, %v1649_v62  ;;  %v1692_v56 = vmov 0   ;;  %v263_v62 = vand.u32 65535, %v259_v50  ;;  %v264_v63 = vshrl.u32 %v259_v50, 16 }
  0x20   :  { %v99_v20 = vadd.f32 1.0, %v1840_v6  ;;  %v80_v27 = vsel %vm1843_vm4, %v77_v13, %v74_v8  ;;  %v102_v30 = vmul.f32 -0.5, %v1840_v6  ;;  %1638 = vset.pattern.permute.xlu1 %v1692_v56  ;;  %1637 = vset.pattern.permute.xlu0 %v1692_v56  ;;  %v1653_v58 = vpop.eup %1652  ;;  %v105_v3 = vand.u32 2147483647, %v1840_v6 }
  0x21   :  { %v89_v12 = vsel %vm1847_vm5, %v86_v15, %v83_v14  ;;  %v1878_v36 = vadd.f32 %v80_v27, %v52_v7  ;;  %1639 = vset.pattern.permute.xlu2 %v1692_v56  ;;  %v249_v5 = vsel %vm247_vm8, %v237_v22, 2102212464  ;;  %v286_v7 = vshrl.u32 %v255_v46, 16 }
  0x22   :  { %v1880_v37 = vadd.f32 %v89_v12, %v53_v11  ;;  %1654 = vlog2.f32 %v99_v20  ;;  %v1888_v44 = vadd.f32 1.0, %v102_v30  ;;  %v248_v9 = vsel %vm244_vm6, %v228_v61, %v231_v10 }
  0x23   :  { %v250_v40 = vsel %vm246_vm7, %v234_v21, %v249_v5  ;;  %v265_v13 = vmul.u32 %v263_v62, %v261_v52  ;;  %v266_v14 = vmul.u32 %v264_v63, %v261_v52  ;;  %v1914_v15 = vmul.f32 0.6931472, %v1653_v58 }
  0x24   :  { %v267_v16 = vmul.u32 %v263_v62, %v262_v53  ;;  %v287_v17 = vmul.u32 %v285_v55, %v261_v52  ;;  %v288_v18 = vmul.u32 %v286_v7, %v261_v52  ;;  %v1917_v19 = vmul.f32 %v1826_v51, %v94_v38 }
  0x25   :  { %v268_v11 = vmul.u32 %v264_v63, %v262_v53  ;;  %v269_v20 = vshll.u32 %v266_v14, 16  ;;  %v289_v22 = vmul.u32 %v285_v55, %v262_v53  ;;  %v1921_v26 = vsel %vm245_vm9, %v248_v9, %v250_v40 }
  0x26   :  { %v271_v10 = vshll.u32 %v267_v16, 16  ;;  %v290_v27 = vmul.u32 %v286_v7, %v262_v53  ;;  %v291_v21 = vshll.u32 %v288_v18, 16  ;;  %v270_v12 = vshrl.u32 %v266_v14, 16 }
  0x27   :  { %vm273_vm10 = vc.u32 %v265_v13, %v269_v20  ;;  %v275_v28 = vadd.s32 %v269_v20, %v265_v13  ;;  %v293_v29 = vshll.u32 %v289_v22, 16  ;;  %v272_v30 = vshrl.u32 %v267_v16, 16 }
  0x28   :  { %v1908_v8 = vpop.eup %1654  ;;  %v274_v31 = vsel %vm273_vm10, 1, %v1692_v56  ;;  %vm295_vm11 = vc.u32 %v287_v17, %v291_v21  ;;  %v297_v33 = vadd.s32 %v291_v21, %v287_v17  ;;  %v367_v45 = vand.u32 2147483647, %v1767_v1 }
  0x29   :  { %v276_v34 = vadd.s32 %v274_v31, %v268_v11  ;;  %vm277_vm12 = vc.u32 %v275_v28, %v271_v10  ;;  %v296_v38 = vsel %vm295_vm11, 1, %v1692_v56  ;;  %v292_v42 = vshrl.u32 %v288_v18, 16 }
  0x2a   :  { %v278_v41 = vsel %vm277_vm12, 1, %v1692_v56  ;;  %v298_v46 = vadd.s32 %v296_v38, %v290_v27  ;;  %vm299_vm13 = vc.u32 %v297_v33, %v293_v29  ;;  %v294_v50 = vshrl.u32 %v289_v22, 16 }
  0x2b   :  { %v280_v48 = vadd.s32 %v278_v41, %v276_v34  ;;  %v300_v52 = vsel %vm299_vm13, 1, %v1692_v56  ;;  %v374_v53 = vand.u32 8388607, %v367_v45  ;;  %v384_v58 = vshll.u32 %v1686_v47, %v1829_v57 }
  0x2c   :  { %v302_v55 = vadd.s32 %v300_v52, %v298_v46  ;;  %v385_v61 = vshrl.u32 %v1687_v49, %v1876_v35  ;;  %v387_v62 = vshll.u32 %v1687_v49, %v1829_v57  ;;  %v1936_v5 = vadd.s32 %v297_v33, %v293_v29 }
  0x2d   :  { %v281_v63 = vadd.s32 %v280_v48, %v270_v12  ;;  %v388_v7 = vshrl.u32 %v1689_v60, %v1876_v35  ;;  %v390_v9 = vshll.u32 %v1689_v60, %v1829_v57  ;;  %v375_v13 = vor.u32 8388608, %v374_v53 }
  0x2e   :  { %v303_v40 = vadd.s32 %v302_v55, %v292_v42  ;;  %v391_v14 = vshrl.u32 %v1688_v54, %v1876_v35  ;;  %v393_v16 = vshll.u32 %v1688_v54, %v1829_v57  ;;  %v1948_v49 = vor.u32 %v385_v61, %v384_v58 }
  0x2f   :  { %v1946_v17 = vadd.s32 %v281_v63, %v272_v30  ;;  %v394_v18 = vshrl.u32 %v1690_v4, %v1876_v35  ;;  %v396_v11 = vshll.u32 %v1690_v4, %v1829_v57  ;;  %v1958_v10 = vor.u32 %v388_v7, %v387_v62 }
  0x30   :  { %v304_v22 = vadd.s32 %v303_v40, %v294_v50  ;;  %v1960_v27 = vor.u32 %v391_v14, %v390_v9  ;;  %v397_v54 = vshrl.u32 %v1691_v23, %v1876_v35  ;;  %v305_v21 = vmul.u32 %v1886_v43, %v1921_v26 }
  0x31   :  { %vm307_vm14 = vc.u32 %v1946_v17, %v1936_v5  ;;  %v395_v12 = vor.u32 %v394_v18, %v393_v16  ;;  %vm399_vm15 = vcmp.lt.s32.totalorder %v1868_v32, 1  ;;  %vm1971_vm2 = vcmp.lt.f32.partialorder %v96_v59, 0.0004427343 }
  0x32   :  { %v104_v4 = vmul.f32 %v1840_v6, %v1888_v44  ;;  %v308_v28 = vadd.s32 1, %v304_v22  ;;  %v398_v23 = vor.u32 %v397_v54, %v396_v11  ;;  %v101_v29 = vmul.f32 0.6931472, %v1908_v8 }
  0x33   :  { %vm400_vm3 = vcmp.lt.s32.totalorder %v1868_v32, 2  ;;  %vm401_vm4 = vcmp.lt.s32.totalorder %v1868_v32, 3  ;;  %vm402_vm5 = vcmp.lt.s32.totalorder %v1868_v32, 4  ;;  %v407_v51 = vsel %vm399_vm15, %v1948_v49, %v1958_v10 }
  0x34   :  { %v309_v43 = vsel %vm307_vm14, %v308_v28, %v304_v22  ;;  %v411_v44 = vsel %vm399_vm15, %v1958_v10, %v1960_v27  ;;  %v1989_v59 = vshll.u32 %v375_v13, 8  ;;  %vm1993_vm6 = vcmp.lt.f32.partialorder %v105_v3, 0.0004427343 }
  0x35   :  { %v310_v26 = vadd.s32 %v309_v43, %v305_v21  ;;  %v408_v30 = vsel %vm402_vm5, %v395_v12, 920167782  ;;  %v412_v31 = vsel %vm402_vm5, %v398_v23, 1326507024  ;;  %v55_v33 = vmax.f32 %v1810_v25, 0.0 }
  0x36   :  { %v409_v34 = vsel %vm401_vm4, %v1960_v27, %v408_v30  ;;  %v413_v6 = vsel %vm401_vm4, %v395_v12, %v412_v31  ;;  %v416_v3 = vand.u32 65535, %v1989_v59  ;;  %v98_v38 = vsel %vm1971_vm2, %v1917_v19, %v1914_v15 }
  0x37   :  { %v311_v41 = vadd.s32 536870912, %v310_v26  ;;  %v410_v42 = vsel %vm400_vm3, %v407_v51, %v409_v34  ;;  %v414_v25 = vsel %vm400_vm3, %v411_v44, %v413_v6  ;;  %v107_v50 = vsel %vm1993_vm6, %v104_v4, %v101_v29 }
  0x38   :  { %v417_v52 = vshrl.u32 %v1989_v59, 16  ;;  %v418_v53 = vand.u32 65535, %v414_v25  ;;  %v419_v55 = vshrl.u32 %v414_v25, 16  ;;  %v440_v15 = vand.u32 65535, %v410_v42 }
  0x39   :  { %v2020_v61 = vshrl.u32 %v311_v41, 30  ;;  %v441_v19 = vshrl.u32 %v410_v42, 16  ;;  %v110_v40 = vadd.f32 %v98_v38, %v54_v2  ;;  %v111_v13 = vadd.f32 %v107_v50, %v55_v33 }
  0x3a   :  { %v420_v63 = vmul.u32 %v418_v53, %v416_v3  ;;  %v421_v7 = vmul.u32 %v419_v55, %v416_v3  ;;  %v2023_v9 = vmul.u32 %v418_v53, %v417_v52  ;;  %v383_v16 = vshrl.u32 %v1686_v47, %v1876_v35 }
  0x3b   :  { %v313_v14 = vshll.u32 %v2020_v61, 30  ;;  %v444_v21 = vmul.u32 %v440_v15, %v417_v52  ;;  %v442_v4 = vmul.u32 %v440_v15, %v416_v3  ;;  %v445_v35 = vmul.u32 %v441_v19, %v417_v52 }
  0x3c   :  { %v424_v18 = vshll.u32 %v421_v7, 16  ;;  %v426_v11 = vshll.u32 %v2023_v9, 16  ;;  %v425_v31 = vshrl.u32 %v421_v7, 16  ;;  %v306_v41 = vadd.s32 %v1936_v5, %v1946_v17 }
  0x3d   :  { %v314_v54 = vsub.s32 %v310_v26, %v313_v14  ;;  %v448_v43 = vshll.u32 %v444_v21, 16  ;;  %v403_v25 = vsel %vm399_vm15, %v383_v16, %v1948_v49  ;;  %v427_v53 = vshrl.u32 %v2023_v9, 16 }
  0x3e   :  { %vm428_vm7 = vc.u32 %v420_v63, %v424_v18  ;;  %v430_v57 = vadd.s32 %v424_v18, %v420_v63  ;;  %vm2072_vm14 = vcmp.le.f32.partialorder %v212_v39, 0.7853982  ;;  %vm214_vm15 = vcmp.lt.s32.totalorder %v1762_v0, 0  ;;  %v840_v39 = vld [vmem:[%s2280_s2] sm:$0xff] }
  0x3f   :  { %vm315_vm8 = vcmp.lt.s32.totalorder %v314_v54, 0  ;;  %v316_v24 = vsub.s32 0, %v314_v54  ;;  %v429_v2 = vsel %vm428_vm7, 1, %v1692_v56  ;;  %vm848_vm2 = vcmask 64512  }
  0x40   :  { %vm432_vm9 = vc.u32 %v430_v57, %v426_v11 }
  0x41   :  { %v317_v8 = vsel %vm315_vm8, %v316_v24, %v314_v54  ;;  %v433_v26 = vsel %vm432_vm9, 1, %v1692_v56 }
  0x42   :  { %v318_v30 = vclz %v317_v8  ;;  %v336_v8 = vsub.s32 4, %v2020_v61 }
  0x44   :  { %v1550_v42 = vadd.s32 4294967294, %v318_v30 }
  0x46   :  { %vm1551_vm12 = vcmp.lt.s32.totalorder %v1550_v42, 0 }
  0x47   :  { %v321_v15 = vsel %vm1551_vm12, 0, %v1550_v42  ;;  %v337_v42 = vsel %vm214_vm15, %v336_v8, %v2020_v61  ;;  %vm369_vm12 = vcmp.lt.s32.totalorder %v1767_v1, 0 }
  0x48   :  { %v323_v49 = vshll.u32 %v314_v54, %v321_v15  ;;  %v326_v63 = vsub.s32 4294967266, %v321_v15  ;;  %v339_v61 = vsel %vm2072_vm14, 0, %v337_v42  ;;  %v989_v42 = vld [vmem:[%s2282_s4] sm:$0xff] }
  0x4a   :  { %v327_v9 = vadd.s32 127, %v326_v63 }
  0x4c   :  { %v328_v54 = vshll.u32 %v327_v9, 23 }
  0x80   :  { %v1954_v20 = vpop.f32.mrf.mxu0  ;;  %v1956_v60 = vpop.f32.mrf.mxu1 }
  0x81   :  { %v185_v32 = vmax.f32 %v1956_v60, 0.0 }
  0x88   :  { %v152_v46 = vpop.f32.mrf.mxu0  ;;  %v178_v48 = vpop.f32.mrf.mxu1 }
  0x89   :  { %v186_v58 = vmul.f32 %v152_v46, %v1878_v36  ;;  %v187_v62 = vmul.f32 %v178_v48, %v1880_v37  ;;  %v423_v36 = vmul.u32 %v419_v55, %v417_v52  ;;  %v443_v37 = vmul.u32 %v441_v19, %v416_v3 }
  0x8b   :  { %v188_v22 = vmul.f32 %v186_v58, %v152_v46  ;;  %v189_v12 = vmul.f32 %v187_v62, %v178_v48  ;;  %v446_v28 = vshll.u32 %v443_v37, 16  ;;  %v431_v47 = vadd.s32 %v429_v2, %v423_v36 }
  0x8c   :  { %v404_v46 = vsel %vm402_vm5, %v1960_v27, 2102212464  ;;  %v447_v19 = vshrl.u32 %v443_v37, 16  ;;  %v322_v62 = vsub.s32 32, %v321_v15  ;;  %v841_v15 = vld [vmem:[%s2280_s2 + $0x8] sm:$0xff] }
  0x8d   :  { %v435_v33 = vadd.s32 %v433_v26, %v431_v47  ;;  %vm450_vm10 = vc.u32 %v442_v4, %v446_v28  ;;  %v452_v38 = vadd.s32 %v446_v28, %v442_v4  ;;  %v405_v27 = vsel %vm401_vm4, %v1958_v10, %v404_v46  ;;  %v208_v28 = vld [vmem:[%s2278_s0 + $0x10] sm:$0xff] }
  0x8e   :  { %v451_v3 = vsel %vm450_vm10, 1, %v1692_v56  ;;  %v324_v16 = vshrl.u32 %v306_v41, %v322_v62  ;;  %v406_v18 = vsel %vm400_vm3, %v403_v25, %v405_v27  ;;  %v329_v10 = vor.u32 4788187, %v328_v54 }
  0x8f   :  { %v453_v52 = vadd.s32 %v451_v3, %v445_v35  ;;  %vm454_vm11 = vc.u32 %v452_v38, %v448_v43  ;;  %v436_v55 = vadd.s32 %v435_v33, %v425_v31  ;;  %v184_v4 = vmax.f32 %v1954_v20, 0.0  ;;  %v209_v35 = vld [vmem:[%s2278_s0 + $0x18] sm:$0xff]  ;;  %v205_v20 = vld [vmem:[%s2278_s0 + $0x8] sm:$0xff]  ;;  %v844_v3 = vld [vmem:[%s2281_s3] sm:$0xff] }
  0x90   :  { %v155_v23 = vpop.f32.mrf.mxu0  ;;  %v181_v29 = vpop.f32.mrf.mxu1  ;;  %v455_v58 = vsel %vm454_vm11, 1, %v1692_v56  ;;  %v2049_v56 = vadd.s32 %v452_v38, %v448_v43  ;;  %v330_v24 = vand.u32 2147483647, %v329_v10  ;;  %v842_v10 = vld [vmem:[%s2280_s2 + $0x10] sm:$0xff]  ;;  %vm355_vm11 = vweird.f32 %v1762_v0 }
  0x91   :  { %v190_v51 = vmul.f32 %v155_v23, %v110_v40  ;;  %v191_v44 = vmul.f32 %v181_v29, %v111_v13  ;;  %v449_v13 = vshrl.u32 %v444_v21, 16  ;;  %v457_v14 = vadd.s32 %v455_v58, %v453_v52 }
  0x92   :  { %v2047_v36 = vadd.s32 %v436_v55, %v427_v53  ;;  %v460_v21 = vmul.u32 %v1989_v59, %v406_v18 }
  0x93   :  { %v192_v34 = vmul.f32 %v190_v51, %v155_v23  ;;  %v193_v6 = vmul.f32 %v191_v44, %v181_v29  ;;  %v458_v11 = vadd.s32 %v457_v14, %v447_v19  ;;  %v204_v23 = vld [vmem:[%s2278_s0] sm:$0xff]  ;;  %v847_v44 = vld [vmem:[%s2281_s3 + $0x18] sm:$0xff] }
  0x94   :  { %vm462_vm13 = vc.u32 %v2047_v36, %v2049_v56  ;;  %v461_v54 = vadd.s32 %v2049_v56, %v2047_v36 }
  0x95   :  { %v194_v48 = vadd.f32 %v192_v34, %v188_v22  ;;  %v195_v50 = vadd.f32 %v193_v6, %v189_v12  ;;  %v325_v22 = vor.u32 %v324_v16, %v323_v49  ;;  %v459_v37 = vadd.s32 %v458_v11, %v449_v13 }
  0x96   :  { %v666_v13 = vand.u32 3, %v339_v61 }
  0x97   :  { %v196_v5 = vsub.f32 0.0, %v194_v48  ;;  %v197_v17 = vsub.f32 0.0, %v195_v50  ;;  %v332_v12 = vcvt.s32.f32 %v325_v22  ;;  %v463_v57 = vadd.s32 1, %v459_v37 }
  0x98   :  { %vm667_vm5 = vcmp.lt.s32.totalorder %v666_v13, 2  ;;  %vm671_vm6 = vcmp.eq.s32.totalorder %v666_v13, 2  ;;  %vm668_vm8 = vcmp.eq.s32.totalorder %v666_v13, 0 }
  0x99   :  { %v198_v7 = vmul.f32 1.442695, %v196_v5  ;;  %v200_v40 = vmul.f32 1.442695, %v197_v17  ;;  %v464_v29 = vsel %vm462_vm13, %v463_v57, %v459_v37  ;;  %v333_v60 = vmul.f32 %v332_v12, %v330_v24  ;;  %v845_v5 = vld [vmem:[%s2281_s3 + $0x8] sm:$0xff]  ;;  %v846_v37 = vld [vmem:[%s2281_s3 + $0x10] sm:$0xff] }
  0x9a   :  { %v465_v43 = vadd.s32 %v464_v29, %v460_v21  ;;  %v356_v17 = vadd.s32 3, %v339_v61  ;;  %vm368_vm13 = vcmp.le.f32.partialorder %v367_v45, 0.7853982 }
  0x9b   :  { %1656 = vpow2.f32 %v198_v7  ;;  %v334_v31 = vxor.u32 2147483648, %v333_v60 }
  0x9c   :  { %1658 = vpow2.f32 %v200_v40  ;;  %v466_v33 = vadd.s32 536870912, %v465_v43  ;;  %v357_v40 = vand.u32 3, %v356_v17 }
  0x9d   :  { %v335_v38 = vsel %vm214_vm15, %v334_v31, %v333_v60 }
  0x9e   :  { %v2086_v41 = vshrl.u32 %v466_v33, 30  ;;  %v338_v25 = vsel %vm2072_vm14, %v1762_v0, %v335_v38  ;;  %vm362_vm4 = vcmp.eq.s32.totalorder %v357_v40, 2  ;;  %vm359_vm9 = vcmp.eq.s32.totalorder %v357_v40, 0 }
  0x9f   :  { %v340_v46 = vmul.f32 %v338_v25, %v338_v25  ;;  %vm358_vm10 = vcmp.lt.s32.totalorder %v357_v40, 2 }
  0xa0   :  { %v468_v48 = vshll.u32 %v2086_v41, 30 }
  0xa1   :  { %v1657_v2 = vpop.eup %1656  ;;  %v341_v50 = vmul.f32 -0.001358992, %v340_v46  ;;  %v348_v52 = vmul.f32 -0.00019511016, %v340_v46 }
  0xa2   :  { %v1659_v59 = vpop.eup %1658  ;;  %v202_v47 = vmul.f32 %v1657_v2, %v184_v4  ;;  %v469_v58 = vsub.s32 %v465_v43, %v468_v48 }
  0xa3   :  { %v203_v51 = vmul.f32 %v1659_v59, %v185_v32  ;;  %v342_v53 = vadd.f32 0.041655596, %v341_v50  ;;  %v349_v55 = vadd.f32 0.008332121, %v348_v52  ;;  %v1071_v50 = vld [vmem:[%s2283_s5] sm:$0xff] }
  0xa4   :  { %v210_v26 = vmul.f32 %v208_v28, %v202_v47  ;;  %v206_v30 = vmul.f32 %v204_v23, %v202_v47  ;;  %vm470_vm3 = vcmp.lt.s32.totalorder %v469_v58, 0  ;;  %v471_v49 = vsub.s32 0, %v469_v58 }
  0xa5   :  { %v211_v34 = vmul.f32 %v209_v35, %v203_v51  ;;  %v207_v6 = vmul.f32 %v205_v20, %v203_v51  ;;  %v343_v19 = vmul.f32 %v342_v53, %v340_v46  ;;  %v350_v62 = vmul.f32 %v349_v55, %v340_v46 }
  0xa6   :  { %876 = vmatpush.msra.mxu2 %v210_v26  ;;  %946 = vmatpush.msrb.mxu0 %v206_v30  ;;  %v472_v7 = vsel %vm470_vm3, %v471_v49, %v469_v58  ;;  %v843_v26 = vld [vmem:[%s2280_s2 + $0x18] sm:$0xff]  ;;  %s1526_s2 = sshll.u32 %s1693_s23, 4  ;;  %s1527_s2 = int_to_ptr.vmem [resolvable:$true] %s1526_s2 }
  0xa7   :  { %905 = vmatpush.msra.mxu3 %v211_v34  ;;  %975 = vmatpush.msrb.mxu1 %v207_v6  ;;  %v344_v63 = vadd.f32 -0.4999988, %v343_v19  ;;  %v351_v27 = vadd.f32 -0.16666654, %v350_v62  ;;  %v473_v14 = vclz %v472_v7  ;;  %v990_v19 = vld [vmem:[%s2282_s4 + $0x8] sm:$0xff] }
  0xa8   :  { %1561 = vmatmul.msk.f32.vlgmr.msra.gmra.mxu2 %vm848_vm2, %v844_v3  ;;  %1565 = vmatmul.msk.f32.vlgmr.msra.gmra.mxu3 %vm848_vm2, %v844_v3  ;;  %v1072_v62 = vld [vmem:[%s2283_s5 + $0x8] sm:$0xff] }
  0xa9   :  { %1573 = vmatmul.msk.f32.vlgmr.msrb.gmra.mxu1 %vm848_vm2, %v840_v39  ;;  %1569 = vmatmul.msk.f32.vlgmr.msrb.gmra.mxu0 %vm848_vm2, %v840_v39  ;;  %v345_v16 = vmul.f32 %v344_v63, %v340_v46  ;;  %v352_v9 = vmul.f32 %v351_v27, %v340_v46  ;;  %v1553_v18 = vadd.s32 4294967294, %v473_v14  ;;  %v491_v39 = vsub.s32 4, %v2086_v41 }
  0xaa   :  { %1582 = vmatpush.msk.msrb.mxu3 %vm125_vm0, %v1767_v1  ;;  %1577 = vmatpush.msk.msrb.mxu2 %vm125_vm0, %v1762_v0 }
  0xab   :  { %v346_v11 = vadd.f32 1.0, %v345_v16  ;;  %v353_v22 = vadd.f32 1.0, %v352_v9  ;;  %vm1554_vm7 = vcmp.lt.s32.totalorder %v1553_v18, 0  ;;  %v492_v48 = vsel %vm369_vm12, %v491_v39, %v2086_v41 }
  0xac   :  { %v476_v57 = vsel %vm1554_vm7, 0, %v1553_v18  ;;  %v494_v45 = vsel %vm368_vm13, 0, %v492_v48 }
  0xad   :  { %v354_v12 = vmul.f32 %v353_v22, %v338_v25  ;;  %v363_v21 = vxor.u32 2147483648, %v346_v11  ;;  %v477_v4 = vsub.s32 32, %v476_v57  ;;  %v478_v24 = vshll.u32 %v469_v58, %v476_v57  ;;  %v1073_v22 = vld [vmem:[%s2283_s5 + $0x10] sm:$0xff] }
  0xae   :  { %v481_v36 = vsub.s32 4294967266, %v476_v57  ;;  %v820_v7 = vand.u32 3, %v494_v45 }
  0xaf   :  { %v360_v56 = vxor.u32 2147483648, %v354_v12  ;;  %v364_v2 = vsel %vm362_vm4, %v363_v21, %v354_v12  ;;  %v673_v32 = vsel %vm671_vm6, %v363_v21, %v354_v12  ;;  %v479_v28 = vshrl.u32 %v461_v54, %v477_v4 }
  0xb0   :  { %1562 = vmatmul.msk.f32.gmra.mxu2 %vm848_vm2, %v845_v5  ;;  %1566 = vmatmul.msk.f32.gmra.mxu3 %vm848_vm2, %v845_v5  ;;  %v482_v23 = vadd.s32 127, %v481_v36  ;;  %v511_v5 = vadd.s32 3, %v494_v45  ;;  %vm825_vm15 = vcmp.eq.s32.totalorder %v820_v7, 2  ;;  %vm822_vm4 = vcmp.eq.s32.totalorder %v820_v7, 0 }
  0xb1   :  { %1574 = vmatmul.msk.f32.gmra.mxu1 %vm848_vm2, %v841_v15  ;;  %1570 = vmatmul.msk.f32.gmra.mxu0 %vm848_vm2, %v841_v15  ;;  %v361_v29 = vsel %vm359_vm9, %v346_v11, %v360_v56  ;;  %v670_v59 = vsel %vm668_vm8, %v346_v11, %v360_v56  ;;  %v480_v20 = vor.u32 %v479_v28, %v478_v24  ;;  %v991_v11 = vld [vmem:[%s2282_s4 + $0x10] sm:$0xff]  ;;  %vm510_vm6 = vweird.f32 %v1767_v1 }
  0xb2   :  { %v365_v47 = vsel %vm358_vm10, %v361_v29, %v364_v2  ;;  %v674_v35 = vsel %vm667_vm5, %v670_v59, %v673_v32  ;;  %v483_v60 = vshll.u32 %v482_v23, 23  ;;  %v512_v27 = vand.u32 3, %v511_v5  ;;  %v1074_v29 = vld [vmem:[%s2283_s5 + $0x18] sm:$0xff]  ;;  %v1159_v59 = vld [vmem:[%s2284_s6] sm:$0xff] }
  0xb3   :  { %v366_v43 = vsel %vm355_vm11, nan, %v365_v47  ;;  %v675_v51 = vsel %vm355_vm11, nan, %v674_v35  ;;  %v487_v30 = vcvt.s32.f32 %v480_v20  ;;  %vm821_vm5 = vcmp.lt.s32.totalorder %v820_v7, 2  ;;  %v1247_v47 = vld [vmem:[%s2285_s7] sm:$0xff]  ;;  %v1160_v35 = vld [vmem:[%s2284_s6 + $0x8] sm:$0xff] }
  0xb4   :  { %v830_v8 = vmul.f32 2.0, %v366_v43  ;;  %1587 = vmatpush.msk.msra.mxu0 %vm125_vm0, %v366_v43  ;;  %v484_v0 = vor.u32 4788187, %v483_v60  ;;  %v834_v34 = vmul.f32 %v675_v51, %v675_v51  ;;  %v836_v6 = vmul.f32 %v366_v43, %v366_v43  ;;  %v1248_v20 = vld [vmem:[%s2285_s7 + $0x8] sm:$0xff]  ;;  %v1161_v60 = vld [vmem:[%s2284_s6 + $0x10] sm:$0xff] }
  0xb5   :  { %vm517_vm14 = vcmp.eq.s32.totalorder %v512_v27, 2  ;;  %vm514_vm3 = vcmp.eq.s32.totalorder %v512_v27, 0  ;;  %v1424_v43 = vld [vmem:[%s2287_s9 + $0x8] sm:$0xff] }
  0xb6   :  { %1607 = vmatpush.msk.msrb.mxu0 %vm125_vm0, %v675_v51  ;;  %v832_v31 = vmul.f32 %v830_v8, %v675_v51  ;;  %v485_v33 = vand.u32 2147483647, %v484_v0  ;;  %v838_v25 = vsub.f32 %v834_v34, %v836_v6  ;;  %v1249_v51 = vld [vmem:[%s2285_s7 + $0x10] sm:$0xff]  ;;  %1434 = vperm.xlu1 %1638, %v1424_v43   ;;  %v1162_v8 = vld [vmem:[%s2284_s6 + $0x18] sm:$0xff] }
  0xb7   :  { %v1250_v0 = vld [vmem:[%s2285_s7 + $0x18] sm:$0xff]  ;;  %v1337_v34 = vld [vmem:[%s2286_s8 + $0x10] sm:$0xff] }
  0xb8   :  { %1563 = vmatmul.msk.f32.gmra.mxu2 %vm848_vm2, %v846_v37  ;;  %1567 = vmatmul.msk.f32.gmra.mxu3 %vm848_vm2, %v846_v37  ;;  %v488_v3 = vmul.f32 %v487_v30, %v485_v33  ;;  %v1335_v30 = vld [vmem:[%s2286_s8] sm:$0xff]  ;;  %v1336_v33 = vld [vmem:[%s2286_s8 + $0x8] sm:$0xff]  ;;  %v1338_v6 = vld [vmem:[%s2286_s8 + $0x18] sm:$0xff] }
  0xb9   :  { %1575 = vmatmul.msk.f32.gmra.mxu1 %vm848_vm2, %v842_v10  ;;  %1571 = vmatmul.msk.f32.gmra.mxu0 %vm848_vm2, %v842_v10 }
  0xba   :  { %1597 = vmatpush.msk.msra.mxu2 %vm125_vm0, %v832_v31  ;;  %v489_v38 = vxor.u32 2147483648, %v488_v3  ;;  %v1425_v31 = vld [vmem:[%s2287_s9 + $0x10] sm:$0xff] }
  0xbc   :  { %v490_v46 = vsel %vm369_vm12, %v489_v38, %v488_v3 }
  0xbd   :  { %v493_v61 = vsel %vm368_vm13, %v1767_v1, %v490_v46  ;;  %v992_v1 = vld [vmem:[%s2282_s4 + $0x18] sm:$0xff] }
  0xbe   :  { %v495_v52 = vmul.f32 %v493_v61, %v493_v61 }
  0xc0   :  { %1564 = vmatmul.msk.f32.gmra.mxu2 %vm848_vm2, %v847_v44  ;;  %1568 = vmatmul.msk.f32.gmra.mxu3 %vm848_vm2, %v847_v44  ;;  %v496_v53 = vmul.f32 -0.001358992, %v495_v52  ;;  %v503_v55 = vmul.f32 -0.00019511016, %v495_v52  ;;  %v1423_v44 = vld [vmem:[%s2287_s9] sm:$0xff] }
  0xc1   :  { %1576 = vmatmul.msk.f32.gmra.mxu1 %vm848_vm2, %v843_v26  ;;  %1572 = vmatmul.msk.f32.gmra.mxu0 %vm848_vm2, %v843_v26  ;;  %vm513_vm2 = vcmp.lt.s32.totalorder %v512_v27, 2  ;;  %v1426_v26 = vld [vmem:[%s2287_s9 + $0x18] sm:$0xff] }
  0xc2   :  { %v497_v58 = vadd.f32 0.041655596, %v496_v53  ;;  %v504_v41 = vadd.f32 0.008332121, %v503_v55  ;;  %1429 = vperm.xlu1 %1638, %v1423_v44   ;;  %1444 = vperm.xlu0 %1637, %v1426_v26   ;;  %v1464_v26 = vld [vmem:[%s2289_s11] sm:$0x7] }
  0xc3   :  { %1467 = vperm.xlu2 %1639, %v1464_v26  }
  0xc4   :  { %v498_v17 = vmul.f32 %v497_v58, %v495_v52  ;;  %v505_v15 = vmul.f32 %v504_v41, %v495_v52 }
  0xc6   :  { %v499_v49 = vadd.f32 -0.4999988, %v498_v17  ;;  %v506_v63 = vadd.f32 -0.16666654, %v505_v15 }
  0xc8   :  { %1578 = vmatmul.msk.f32.vlgmr.msrb.gmra.mxu2 %vm115_vm1, %v989_v42  ;;  %1583 = vmatmul.msk.f32.vlgmr.msrb.gmra.mxu3 %vm115_vm1, %v989_v42  ;;  %v500_v40 = vmul.f32 %v499_v49, %v495_v52  ;;  %v507_v13 = vmul.f32 %v506_v63, %v495_v52 }
  0xc9   :  { %1588 = vmatmul.msk.f32.vlgmr.msra.gmra.mxu0 %vm115_vm1, %v1071_v50  ;;  %1617 = vmatpush.msk.msrb.mxu2 %vm125_vm0, %v838_v25 }
  0xca   :  { %v501_v14 = vadd.f32 1.0, %v500_v40  ;;  %v508_v16 = vadd.f32 1.0, %v507_v13  ;;  %1439 = vperm.xlu0 %1637, %v1425_v31  }
  0xcc   :  { %v509_v9 = vmul.f32 %v508_v16, %v493_v61  ;;  %v518_v18 = vxor.u32 2147483648, %v501_v14 }
  0xce   :  { %v515_v54 = vxor.u32 2147483648, %v509_v9  ;;  %v519_v37 = vsel %vm517_vm14, %v518_v18, %v509_v9  ;;  %v827_v10 = vsel %vm825_vm15, %v518_v18, %v509_v9 }
  0xd0   :  { %1579 = vmatmul.msk.f32.gmra.mxu2 %vm115_vm1, %v990_v19  ;;  %1584 = vmatmul.msk.f32.gmra.mxu3 %vm115_vm1, %v990_v19  ;;  %v516_v12 = vsel %vm514_vm3, %v501_v14, %v515_v54  ;;  %v824_v21 = vsel %vm822_vm4, %v501_v14, %v515_v54 }
  0xd1   :  { %1589 = vmatmul.msk.f32.gmra.mxu0 %vm115_vm1, %v1072_v62  ;;  %v520_v57 = vsel %vm513_vm2, %v516_v12, %v519_v37  ;;  %v828_v4 = vsel %vm821_vm5, %v824_v21, %v827_v10 }
  0xd2   :  { %v521_v24 = vsel %vm510_vm6, nan, %v520_v57  ;;  %v829_v36 = vsel %vm510_vm6, nan, %v828_v4 }
  0xd3   :  { %v831_v56 = vmul.f32 2.0, %v521_v24  ;;  %v835_v2 = vmul.f32 %v829_v36, %v829_v36  ;;  %v837_v32 = vmul.f32 %v521_v24, %v521_v24  ;;  %1592 = vmatpush.msk.msra.mxu1 %vm125_vm0, %v521_v24 }
  0xd4   :  { %1593 = vmatmul.msk.f32.vlgmr.msra.gmra.mxu1 %vm115_vm1, %v1071_v50 }
  0xd5   :  { %v833_v28 = vmul.f32 %v831_v56, %v829_v36  ;;  %v839_v23 = vsub.f32 %v835_v2, %v837_v32  ;;  %1612 = vmatpush.msk.msrb.mxu1 %vm125_vm0, %v829_v36 }
  0xd7   :  { %1602 = vmatpush.msk.msra.mxu3 %vm125_vm0, %v833_v28 }
  0xd8   :  { %1580 = vmatmul.msk.f32.gmra.mxu2 %vm115_vm1, %v991_v11  ;;  %1585 = vmatmul.msk.f32.gmra.mxu3 %vm115_vm1, %v991_v11 }
  0xd9   :  { %1590 = vmatmul.msk.f32.gmra.mxu0 %vm115_vm1, %v1073_v22  ;;  %1622 = vmatpush.msk.msrb.mxu3 %vm125_vm0, %v839_v23  ;;  %vm1470_vm0 = vcmask 261120  }
  0xdc   :  { %1594 = vmatmul.msk.f32.gmra.mxu1 %vm115_vm1, %v1072_v62 }
  0xe0   :  { %1581 = vmatmul.msk.f32.gmra.mxu2 %vm115_vm1, %v992_v1  ;;  %1586 = vmatmul.msk.f32.gmra.mxu3 %vm115_vm1, %v992_v1 }
  0xe1   :  { %1591 = vmatmul.msk.f32.gmra.mxu0 %vm115_vm1, %v1074_v29 }
  0xe4   :  { %1595 = vmatmul.msk.f32.gmra.mxu1 %vm115_vm1, %v1073_v22 }
  0xe8   :  { %1598 = vmatmul.msk.f32.vlgmr.msra.gmra.mxu2 %vm115_vm1, %v1159_v59  ;;  %1603 = vmatmul.msk.f32.vlgmr.msra.gmra.mxu3 %vm115_vm1, %v1159_v59 }
  0xe9   :  { %1608 = vmatmul.msk.f32.vlgmr.msrb.gmra.mxu0 %vm115_vm1, %v1247_v47 }
  0xec   :  { %1596 = vmatmul.msk.f32.gmra.mxu1 %vm115_vm1, %v1074_v29 }
  0xf0   :  { %1599 = vmatmul.msk.f32.gmra.mxu2 %vm115_vm1, %v1160_v35  ;;  %1604 = vmatmul.msk.f32.gmra.mxu3 %vm115_vm1, %v1160_v35 }
  0xf1   :  { %1609 = vmatmul.msk.f32.gmra.mxu0 %vm115_vm1, %v1248_v20 }
  0xf4   :  { %1613 = vmatmul.msk.f32.vlgmr.msrb.gmra.mxu1 %vm115_vm1, %v1247_v47 }
  0xf8   :  { %1600 = vmatmul.msk.f32.gmra.mxu2 %vm115_vm1, %v1161_v60  ;;  %1605 = vmatmul.msk.f32.gmra.mxu3 %vm115_vm1, %v1161_v60 }
  0xf9   :  { %1610 = vmatmul.msk.f32.gmra.mxu0 %vm115_vm1, %v1249_v51 }
  0xfc   :  { %1614 = vmatmul.msk.f32.gmra.mxu1 %vm115_vm1, %v1248_v20 }
 0x100   :  { %1601 = vmatmul.msk.f32.gmra.mxu2 %vm115_vm1, %v1162_v8  ;;  %1606 = vmatmul.msk.f32.gmra.mxu3 %vm115_vm1, %v1162_v8 }
 0x101   :  { %1611 = vmatmul.msk.f32.gmra.mxu0 %vm115_vm1, %v1250_v0 }
 0x104   :  { %1615 = vmatmul.msk.f32.gmra.mxu1 %vm115_vm1, %v1249_v51 }
 0x108   :  { %1618 = vmatmul.msk.f32.vlgmr.msrb.gmra.mxu2 %vm115_vm1, %v1335_v30  ;;  %1623 = vmatmul.msk.f32.vlgmr.msrb.gmra.mxu3 %vm115_vm1, %v1335_v30 }
 0x10c   :  { %1616 = vmatmul.msk.f32.gmra.mxu1 %vm115_vm1, %v1250_v0 }
 0x110   :  { %1619 = vmatmul.msk.f32.gmra.mxu2 %vm115_vm1, %v1336_v33  ;;  %1624 = vmatmul.msk.f32.gmra.mxu3 %vm115_vm1, %v1336_v33 }
 0x118   :  { %1620 = vmatmul.msk.f32.gmra.mxu2 %vm115_vm1, %v1337_v34  ;;  %1625 = vmatmul.msk.f32.gmra.mxu3 %vm115_vm1, %v1337_v34 }
 0x120   :  { %1621 = vmatmul.msk.f32.gmra.mxu2 %vm115_vm1, %v1338_v6  ;;  %1626 = vmatmul.msk.f32.gmra.mxu3 %vm115_vm1, %v1338_v6  ;;  %vm1517_vm1 = vcmask 1043456  }
 0x126   :  { %v977_v3 = vpop.f32.mrf.mxu1  ;;  %v948_v39 = vpop.f32.mrf.mxu0 }
 0x12b   :  { %v878_v38 = vpop.f32.mrf.mxu2  ;;  %v907_v42 = vpop.f32.mrf.mxu3 }
 0x12c   :  { %v978_v25 = vadd.f32 %v977_v3, %v907_v42  ;;  %v949_v46 = vadd.f32 %v948_v39, %v878_v38 }
 0x12e   :  { %v980_v48 = vpop.f32.mrf.mxu1  ;;  %v951_v61 = vpop.f32.mrf.mxu0 }
 0x133   :  { %v881_v50 = vpop.f32.mrf.mxu2  ;;  %v910_v52 = vpop.f32.mrf.mxu3 }
 0x134   :  { %v981_v45 = vadd.f32 %v980_v48, %v910_v52  ;;  %v952_v53 = vadd.f32 %v951_v61, %v881_v50  ;;  %v1445_v42 = vpop.permute.xlu0 %1444 }
 0x136   :  { %v983_v55 = vpop.f32.mrf.mxu1  ;;  %v954_v58 = vpop.f32.mrf.mxu0 }
 0x13b   :  { %v884_v41 = vpop.f32.mrf.mxu2  ;;  %v913_v5 = vpop.f32.mrf.mxu3 }
 0x13c   :  { %v984_v17 = vadd.f32 %v983_v55, %v913_v5  ;;  %v955_v15 = vadd.f32 %v954_v58, %v884_v41 }
 0x13e   :  { %v957_v40 = vpop.f32.mrf.mxu0  ;;  %v986_v13 = vpop.f32.mrf.mxu1 }
 0x143   :  { %v887_v19 = vpop.f32.mrf.mxu2  ;;  %v916_v62 = vpop.f32.mrf.mxu3 }
 0x144   :  { %v987_v6 = vadd.f32 %v986_v13, %v916_v62  ;;  %v958_v3 = vadd.f32 %v957_v40, %v887_v19 }
 0x146   :  { %v1110_v11 = vpop.f32.mrf.mxu0 }
 0x14b   :  { %v1022_v49 = vpop.f32.mrf.mxu2  ;;  %v1051_v63 = vpop.f32.mrf.mxu3 }
 0x14c   :  { %v1063_v27 = vadd.f32 %v1022_v49, %v949_v46  ;;  %v1064_v7 = vadd.f32 %v1051_v63, %v978_v25  ;;  %v1435_v49 = vpop.permute.xlu1 %1434 }
 0x14e   :  { %v1113_v21 = vpop.f32.mrf.mxu0  ;;  %v1151_v41 = vadd.f32 %v1110_v11, %v1063_v27 }
 0x151   :  { %v1139_v22 = vpop.f32.mrf.mxu1 }
 0x152   :  { %v1152_v5 = vadd.f32 %v1139_v22, %v1064_v7 }
 0x153   :  { %v1025_v14 = vpop.f32.mrf.mxu2  ;;  %v1054_v16 = vpop.f32.mrf.mxu3 }
 0x154   :  { %v1065_v9 = vadd.f32 %v1025_v14, %v952_v53  ;;  %v1066_v18 = vadd.f32 %v1054_v16, %v981_v45 }
 0x156   :  { %v1116_v2 = vpop.f32.mrf.mxu0  ;;  %v1153_v48 = vadd.f32 %v1113_v21, %v1065_v9 }
 0x159   :  { %v1142_v57 = vpop.f32.mrf.mxu1 }
 0x15a   :  { %v1154_v61 = vadd.f32 %v1142_v57, %v1066_v18  ;;  %v1440_v57 = vpop.permute.xlu0 %1439 }
 0x15b   :  { %v1028_v54 = vpop.f32.mrf.mxu2  ;;  %v1057_v37 = vpop.f32.mrf.mxu3 }
 0x15c   :  { %v1067_v10 = vadd.f32 %v1028_v54, %v955_v15  ;;  %v1068_v12 = vadd.f32 %v1057_v37, %v984_v17 }
 0x15e   :  { %v1119_v23 = vpop.f32.mrf.mxu0  ;;  %v1155_v25 = vadd.f32 %v1116_v2, %v1067_v10 }
 0x161   :  { %v1145_v32 = vpop.f32.mrf.mxu1 }
 0x162   :  { %v1156_v46 = vadd.f32 %v1145_v32, %v1068_v12 }
 0x163   :  { %v1031_v4 = vpop.f32.mrf.mxu2  ;;  %v1060_v24 = vpop.f32.mrf.mxu3 }
 0x164   :  { %v1069_v39 = vadd.f32 %v1031_v4, %v958_v3  ;;  %v1070_v38 = vadd.f32 %v1060_v24, %v987_v6 }
 0x166   :  { %v1286_v35 = vpop.f32.mrf.mxu0  ;;  %v1157_v45 = vadd.f32 %v1119_v23, %v1069_v39 }
 0x169   :  { %v1148_v29 = vpop.f32.mrf.mxu1 }
 0x16a   :  { %v1158_v53 = vadd.f32 %v1148_v29, %v1070_v38 }
 0x16b   :  { %v1198_v36 = vpop.f32.mrf.mxu2  ;;  %v1227_v56 = vpop.f32.mrf.mxu3 }
 0x16c   :  { %v1239_v63 = vadd.f32 %v1198_v36, %v1151_v41  ;;  %v1240_v40 = vadd.f32 %v1227_v56, %v1152_v5 }
 0x16e   :  { %v1289_v51 = vpop.f32.mrf.mxu0  ;;  %v1327_v27 = vadd.f32 %v1286_v35, %v1239_v63 }
 0x171   :  { %v1315_v20 = vpop.f32.mrf.mxu1 }
 0x172   :  { %v1328_v7 = vadd.f32 %v1315_v20, %v1240_v40 }
 0x173   :  { %v1201_v1 = vpop.f32.mrf.mxu2  ;;  %v1230_v28 = vpop.f32.mrf.mxu3 }
 0x174   :  { %v1241_v17 = vadd.f32 %v1201_v1, %v1153_v48  ;;  %v1242_v15 = vadd.f32 %v1230_v28, %v1154_v61 }
 0x176   :  { %v1292_v33 = vpop.f32.mrf.mxu0  ;;  %v1329_v18 = vadd.f32 %v1289_v51, %v1241_v17 }
 0x179   :  { %v1318_v44 = vpop.f32.mrf.mxu1 }
 0x17a   :  { %v1330_v54 = vadd.f32 %v1318_v44, %v1242_v15 }
 0x17b   :  { %v1204_v59 = vpop.f32.mrf.mxu2  ;;  %v1233_v47 = vpop.f32.mrf.mxu3 }
 0x17c   :  { %v1243_v55 = vadd.f32 %v1204_v59, %v1155_v25  ;;  %v1244_v58 = vadd.f32 %v1233_v47, %v1156_v46  ;;  %v1430_v59 = vpop.permute.xlu1 %1429 }
 0x17e   :  { %v1295_v13 = vpop.f32.mrf.mxu0  ;;  %v1331_v16 = vadd.f32 %v1292_v33, %v1243_v55  ;;  %v1463_v33 = vld [vmem:[%s2288_s10] sm:$0x7] }
 0x181   :  { %v1321_v34 = vpop.f32.mrf.mxu1 }
 0x182   :  { %v1332_v9 = vadd.f32 %v1321_v34, %v1244_v58  ;;  %v1468_v34 = vpop.permute.xlu2 %1467 }
 0x183   :  { %v1207_v60 = vpop.f32.mrf.mxu2  ;;  %v1236_v43 = vpop.f32.mrf.mxu3 }
 0x184   :  { %v1245_v62 = vadd.f32 %v1207_v60, %v1157_v45  ;;  %v1246_v19 = vadd.f32 %v1236_v43, %v1158_v53 }
 0x186   :  { %v1333_v37 = vadd.f32 %v1295_v13, %v1245_v62 }
 0x189   :  { %v1324_v14 = vpop.f32.mrf.mxu1 }
 0x18a   :  { %v1334_v10 = vadd.f32 %v1324_v14, %v1246_v19 }
 0x18b   :  { %v1374_v8 = vpop.f32.mrf.mxu2  ;;  %v1403_v0 = vpop.f32.mrf.mxu3 }
 0x18c   :  { %v1415_v56 = vadd.f32 %v1374_v8, %v1327_v27  ;;  %v1416_v32 = vadd.f32 %v1403_v0, %v1328_v7 }
 0x18e   :  { %v1447_v44 = vadd.f32 %v1430_v59, %v1415_v56  ;;  %v1448_v35 = vadd.f32 %v1430_v59, %v1416_v32 }
 0x190   :  { %v1455_v8 = vmax.f32 %v1447_v44, 0.0  ;;  %v1456_v0 = vmax.f32 %v1448_v35, 0.0 }
 0x193   :  { %v1377_v30 = vpop.f32.mrf.mxu2  ;;  %v1406_v31 = vpop.f32.mrf.mxu3 }
 0x194   :  { %v1417_v4 = vadd.f32 %v1377_v30, %v1329_v18  ;;  %v1418_v24 = vadd.f32 %v1406_v31, %v1330_v54 }
 0x196   :  { %v1449_v47 = vadd.f32 %v1435_v49, %v1417_v4  ;;  %v1450_v60 = vadd.f32 %v1435_v49, %v1418_v24 }
 0x198   :  { %v1457_v30 = vmax.f32 %v1449_v47, 0.0  ;;  %v1458_v31 = vmax.f32 %v1450_v60, 0.0 }
 0x19b   :  { %v1380_v50 = vpop.f32.mrf.mxu2  ;;  %v1409_v52 = vpop.f32.mrf.mxu3 }
 0x19c   :  { %v1419_v12 = vadd.f32 %v1380_v50, %v1331_v16  ;;  %v1420_v21 = vadd.f32 %v1409_v52, %v1332_v9 }
 0x19e   :  { %v1451_v1 = vadd.f32 %v1440_v57, %v1419_v12  ;;  %v1452_v28 = vadd.f32 %v1440_v57, %v1420_v21 }
 0x1a0   :  { %v1459_v20 = vmax.f32 %v1451_v1, 0.0  ;;  %v1460_v26 = vmax.f32 %v1452_v28, 0.0 }
 0x1a3   :  { %v1383_v11 = vpop.f32.mrf.mxu2  ;;  %v1412_v22 = vpop.f32.mrf.mxu3 }
 0x1a4   :  { %v1421_v2 = vadd.f32 %v1383_v11, %v1333_v37  ;;  %v1422_v36 = vadd.f32 %v1412_v22, %v1334_v10 }
 0x1a6   :  { %v1453_v23 = vadd.f32 %v1445_v42, %v1421_v2  ;;  %v1454_v29 = vadd.f32 %v1445_v42, %v1422_v36 }
 0x1a8   :  { %v1461_v43 = vmax.f32 %v1453_v23, 0.0  ;;  %v1462_v51 = vmax.f32 %v1454_v29, 0.0 }
 0x1aa   :  { %1486 = vmatpush.msra.mxu0 %v1461_v43  ;;  %1506 = vmatpush.msra.mxu1 %v1462_v51 }
 0x1ac   :  { %1487 = vmatpush.msra.mxu0 %v1459_v20  ;;  %1507 = vmatpush.msra.mxu1 %v1460_v26 }
 0x1ae   :  { %1488 = vmatpush.msra.mxu0 %v1457_v30  ;;  %1508 = vmatpush.msra.mxu1 %v1458_v31 }
 0x1b0   :  { %1489 = vmatpush.msra.mxu0 %v1455_v8  ;;  %1509 = vmatpush.msra.mxu1 %v1456_v0 }
 0x1b1   :  { %1628 = vmatmul.msk.f32.vlgmr.msra.gmra.mxu1 %vm1470_vm0, %v1463_v33  ;;  %1627 = vmatmul.msk.f32.vlgmr.msra.gmra.mxu0 %vm1470_vm0, %v1463_v33 }
 0x22e   :  { %v1511_v6 = vpop.f32.mrf.mxu1  ;;  %v1491_v3 = vpop.f32.mrf.mxu0 }
 0x22f   :  { %v1512_v39 = vadd.f32 %v1511_v6, %v1468_v34  ;;  %v1492_v42 = vadd.f32 %v1491_v3, %v1468_v34 }
 0x231   :  { %v1516_v38 = vrot.slane %v1512_v39, 4 }
 0x233   :  { %v1518_v25 = vsel %vm1517_vm1, %v1492_v42, %v1516_v38 }
 0x234   :  { %1520 = vst [vmem:[#allocation2] sm:$0x77] %v1518_v25 }
 0x235   :  { %1531 = dma.vmem_to_hbm [thread:$0]  %s1527_s2, 128, %s1529_s25, [#allocation3]  }
 0x236   :  { %1684 = dma.done.wait [#allocation3], 128  }
 0x237   :  { %1685 = vsyncadd [#allocation3], 4294967168 }
 0x238   :  { %1536 = vsyncpa [#allocation3], 1 }

</bundles_post_ra>
